<compile_context>
chip_gen: v6e
topology: v6e:2x2x1
jax: 0.10.0
libtpu: 0.0.40
codegen_flags: <defaults>
</compile_context>

<pallas_src>
import functools

import jax
import jax.numpy as jnp
from jax.experimental import pallas as pl
from jax.experimental.pallas import tpu as pltpu

_HIDDEN = (128, 256, 256, 128, 64)
_ROW_ALIGN = 16    # bf16 sublane tile


def _round_up(x, m):
    return (x + m - 1) // m * m


def _layer_dims(state_dim, action_dim):
    ins = (state_dim,) + _HIDDEN
    outs = _HIDDEN + (action_dim,)
    return ins, outs


# --------------------------------------------------------------------------
# Parameter packing: 12 small arrays -> two bf16 weight slabs (128-lane and
# 256-lane) + one (8, 256) f32 bias slab.  Pad lanes / pad rows are zeros, so
# padded activation lanes stay exactly zero through the whole network.
# --------------------------------------------------------------------------
def pack_actor_params(params, state_dim, action_dim):
    ins, outs = _layer_dims(state_dim, action_dim)
    n_layers = len(ins)

    lane_w = tuple(_round_up(o, 128) for o in outs)          # 128,256,256,128,128,128
    # Contraction width per layer = lane width of the previous activation
    # (raw state_dim for layer 1) -> no activation slicing inside the kernel.
    rows_use = (state_dim,) + lane_w[:-1]
    # Allocated rows in the slab (layer 1 row-padded to the bf16 sublane tile).
    rows_pad = (_round_up(state_dim, _ROW_ALIGN),) + lane_w[:-1]

    slab_of = tuple(0 if lw == 128 else 1 for lw in lane_w)

    blocks = {0: [], 1: []}
    cursor = {0: 0, 1: 0}
    offsets = []
    for i in range(n_layers):
        fi, fo, lw, rp, s = ins[i], outs[i], lane_w[i], rows_pad[i], slab_of[i]
        blk = jnp.zeros((rp, lw), jnp.float32)
        blk = blk.at[:fi, :fo].set(params[f"w{i + 1}"].astype(jnp.float32))
        blocks[s].append(blk)
        offsets.append(cursor[s])
        cursor[s] += rp
    w128 = jnp.concatenate(blocks[0], axis=0).astype(jnp.bfloat16)
    w256 = jnp.concatenate(blocks[1], axis=0).astype(jnp.bfloat16)

    b_slab = jnp.zeros((8, 256), jnp.float32)
    for i, fo in enumerate(outs):
        b_slab = b_slab.at[i, :fo].set(
            params[f"b{i + 1}"].reshape(-1).astype(jnp.float32))

    layers = tuple(zip(slab_of, offsets, rows_use, lane_w))
    meta = dict(layers=layers, state_dim=state_dim, action_dim=action_dim,
                in_dims=ins, out_dims=outs)
    return w128, w256, b_slab, meta


# --------------------------------------------------------------------------
# Kernel: whole MLP fused; back-to-back MXU matmuls, f32 accumulation,
# bf16 inter-layer activations, lane-dense (bb, 128) output store.
# --------------------------------------------------------------------------
def _actor_kernel(state_ref, w128_ref, w256_ref, b_ref, out_ref, *,
                  layers, v_max, w_max):
    x = state_ref[...]                       # (bb, state_dim) bf16
    biases = b_ref[...]                      # (8, 256) f32, loaded once
    w_refs = (w128_ref, w256_ref)

    n_layers = len(layers)
    a = None
    for li, (slab, off, rows, lane_w) in enumerate(layers):
        w = w_refs[slab][off:off + rows, :]  # (rows, lane_w) bf16, static slice
        y = jnp.dot(x, w, preferred_element_type=jnp.float32)   # (bb, lane_w) f32
        y = y + biases[li:li + 1, :lane_w]
        if li < n_layers - 1:
            # pad lanes are exactly zero (zero W cols + zero bias); the next
            # layer's extra weight rows are zero too, so no slicing is needed.
            x = jnp.maximum(y, 0.0).astype(jnp.bfloat16)
        else:
            a = y                            # (bb, 128) f32, lanes >= action_dim == 0

    # column 0 -> sigmoid * v_max, column 1 -> tanh * w_max, rest pass through
    col = jax.lax.broadcasted_iota(jnp.int32, a.shape, 1)
    a = jnp.where(col == 0, jax.nn.sigmoid(a) * v_max,
                  jnp.where(col == 1, jnp.tanh(a) * w_max, a))

    out_ref[...] = a.astype(out_ref.dtype)


# --------------------------------------------------------------------------
# Wrapper
# --------------------------------------------------------------------------
def actor_forward(state, packed, action_v_max, action_w_max):
    """Actor forward pass as a single Pallas TPU kernel.

    state: (B, state_dim) or (state_dim,) float array.
    packed: output of pack_actor_params.
    """
    w128, w256, b_slab, meta = packed
    state_dim = meta["state_dim"]
    action_dim = meta["action_dim"]
    layers = meta["layers"]

    squeeze = state.ndim == 1
    if squeeze:
        state = state[None, :]
    batch = state.shape[0]

    # bf16 producer cast: halves the input DMA and removes an in-kernel pack.
    xs = state.astype(jnp.bfloat16)

    # Batch blocking: tiny batches -> single block whose dims equal the full
    # array (no padding, no masking); otherwise >= 2 blocks of up to 1024 rows
    # (multiple of 16) so the parallel axis shards across v7x TensorCores and
    # per-grid-step overhead is amortized.
    if batch < 16:
        bb = batch
    else:
        bb = min(1024, _round_up(pl.cdiv(batch, 2), 16))
    grid = (pl.cdiv(batch, bb),)

    flops = 2 * batch * sum(r * lw for (_, _, r, lw) in layers)
    bytes_accessed = (xs.size * 2 + w128.size * 2 + w256.size * 2
                      + b_slab.size * 4 + batch * 128 * 4)

    kernel = functools.partial(
        _actor_kernel,
        layers=layers,
        v_max=float(action_v_max),
        w_max=float(action_w_max),
    )

    out = pl.pallas_call(
        kernel,
        out_shape=jax.ShapeDtypeStruct((batch, 128), jnp.float32),
        grid=grid,
        in_specs=[
            pl.BlockSpec((bb, state_dim), lambda i: (i, 0)),
            pl.BlockSpec(w128.shape, lambda i: (0, 0)),
            pl.BlockSpec(w256.shape, lambda i: (0, 0)),
            pl.BlockSpec(b_slab.shape, lambda i: (0, 0)),
        ],
        out_specs=pl.BlockSpec((bb, 128), lambda i: (i, 0)),
        compiler_params=pltpu.CompilerParams(
            dimension_semantics=("parallel",)),
        cost_estimate=pl.CostEstimate(
            flops=int(flops),
            transcendentals=int(2 * batch * 128),
            bytes_accessed=int(bytes_accessed)),
    )(xs, w128, w256, b_slab)

    out = out[:, :action_dim]
    if squeeze:
        out = out[0]
    return out


# --------------------------------------------------------------------------
# Init + references
# --------------------------------------------------------------------------
def init_actor_params(key, state_dim, action_dim):
    """Xavier-uniform weights (stored (in, out)), biases filled with 0.01."""
    dims = [state_dim, *_HIDDEN, action_dim]
    params = {}
    keys = jax.random.split(key, len(dims) - 1)
    for i, (fan_in, fan_out) in enumerate(zip(dims[:-1], dims[1:]), start=1):
        bound = (6.0 / (fan_in + fan_out)) ** 0.5
        params[f"w{i}"] = jax.random.uniform(
            keys[i - 1], (fan_in, fan_out), jnp.float32, -bound, bound)
        params[f"b{i}"] = jnp.full((1, fan_out), 0.01, jnp.float32)
    return params


def _reference_forward_bf16(state, params, v_max, w_max):
    """Same numerics as the kernel (bf16 operands, f32 accumulation)."""
    x = state.astype(jnp.bfloat16)
    for i in range(1, 6):
        w = params[f"w{i}"].astype(jnp.bfloat16)
        y = jnp.dot(x, w, preferred_element_type=jnp.float32) + params[f"b{i}"]
        x = jnp.maximum(y, 0.0).astype(jnp.bfloat16)
    w6 = params["w6"].astype(jnp.bfloat16)
    a = jnp.dot(x, w6, preferred_element_type=jnp.float32) + params["b6"]
    a = a.at[:, 0].set(jax.nn.sigmoid(a[:, 0]) * v_max)
    a = a.at[:, 1].set(jnp.tanh(a[:, 1]) * w_max)
    return a


def _reference_forward_f32(state, params, v_max, w_max):
    x = state
    for i in range(1, 6):
        x = jnp.maximum(x @ params[f"w{i}"] + params[f"b{i}"], 0.0)
    a = x @ params["w6"] + params["b6"]
    a = a.at[:, 0].set(jax.nn.sigmoid(a[:, 0]) * v_max)
    a = a.at[:, 1].set(jnp.tanh(a[:, 1]) * w_max)
    return a


if __name__ == "__main__":
    state_dim = 16
    action_dim = 2
    batch = 8
    action_v_max = 0.22
    action_w_max = 2.0

    key = jax.random.PRNGKey(0)
    pkey, skey, skey2 = jax.random.split(key, 3)
    params = init_actor_params(pkey, state_dim, action_dim)
    packed = pack_actor_params(params, state_dim, action_dim)

    # --- small batch (single block, grid=(1,)) ---
    state = jax.random.normal(skey, (batch, state_dim), jnp.float32)
    action = actor_forward(state, packed, action_v_max, action_w_max)
    action = jax.block_until_ready(action)

    ref_bf16 = _reference_forward_bf16(state, params, action_v_max, action_w_max)
    ref_f32 = _reference_forward_f32(state, params, action_v_max, action_w_max)

    assert action.shape == (batch, action_dim)
    # bit-for-bit style check against the bf16/f32-accum reference
    assert jnp.allclose(action, ref_bf16, atol=5e-3, rtol=5e-3), (
        float(jnp.max(jnp.abs(action - ref_bf16))))
    # semantic check against the full-f32 PyTorch-equivalent reference
    assert jnp.allclose(action, ref_f32, atol=1e-1, rtol=5e-2), (
        float(jnp.max(jnp.abs(action - ref_f32))))

    # --- multi-block path (grid=(2,), partial last block) ---
    batch2 = 40
    state2 = jax.random.normal(skey2, (batch2, state_dim), jnp.float32)
    action2 = actor_forward(state2, packed, action_v_max, action_w_max)
    action2 = jax.block_until_ready(action2)
    ref2 = _reference_forward_f32(state2, params, action_v_max, action_w_max)
    assert action2.shape == (batch2, action_dim)
    assert jnp.allclose(action2, ref2, atol=1e-1, rtol=5e-2), (
        float(jnp.max(jnp.abs(action2 - ref2))))

    print("KERNEL_OK")
</pallas_src>

<mosaic_0001>
module attributes {stable_mosaic.version = 11 : i64} {
  func.func @_actor_kernel(%arg0: i32, %arg1: memref<8x16xbf16, #tpu.memory_space<vmem>>, %arg2: memref<528x128xbf16, #tpu.memory_space<vmem>>, %arg3: memref<384x256xbf16, #tpu.memory_space<vmem>>, %arg4: memref<8x256xf32, #tpu.memory_space<vmem>>, %arg5: memref<8x128xf32, #tpu.memory_space<vmem>>) attributes {dimension_semantics = [#tpu.dimension_semantics<parallel>], iteration_bounds = array<i64: 1>, scalar_prefetch = 0 : i64, scratch_operands = 0 : i64, tpu.core_type = #tpu.core_type<tc>, window_params = [{transform_indices = @transform_0, window_bounds = array<i64: 8, 16>}, {pipeline_mode = #tpu.pipeline_mode<synchronous>, transform_indices = @transform_1, window_bounds = array<i64: 528, 128>}, {pipeline_mode = #tpu.pipeline_mode<synchronous>, transform_indices = @transform_2, window_bounds = array<i64: 384, 256>}, {pipeline_mode = #tpu.pipeline_mode<synchronous>, transform_indices = @transform_3, window_bounds = array<i64: 8, 256>}, {transform_indices = @transform_4, window_bounds = array<i64: 8, 128>}]} {
    %c0 = arith.constant 0 : index
    %c0_0 = arith.constant 0 : index
    %0 = vector.load %arg1[%c0, %c0_0] : memref<8x16xbf16, #tpu.memory_space<vmem>>, vector<8x16xbf16>
    %c0_1 = arith.constant 0 : index
    %c0_2 = arith.constant 0 : index
    %1 = vector.load %arg4[%c0_1, %c0_2] : memref<8x256xf32, #tpu.memory_space<vmem>>, vector<8x256xf32>
    %c0_3 = arith.constant 0 : index
    %c0_4 = arith.constant 0 : index
    %2 = vector.load %arg2[%c0_3, %c0_4] : memref<528x128xbf16, #tpu.memory_space<vmem>>, vector<16x128xbf16>
    %cst = arith.constant dense<0.000000e+00> : vector<8x128xf32>
    %3 = tpu.matmul %0, %2, %cst {dimension_numbers = #tpu.dot_dimension_numbers<[1], [0], [0], [1], [0, 0, 1, 1], [], []>} : vector<8x16xbf16>, vector<16x128xbf16>, vector<8x128xf32> -> vector<8x128xf32>
    %4 = vector.extract_strided_slice %1 {offsets = [0, 0], sizes = [1, 128], strides = [1, 1]} : vector<8x256xf32> to vector<1x128xf32>
    %5 = vector.broadcast %4 : vector<1x128xf32> to vector<8x128xf32>
    %6 = arith.addf %3, %5 : vector<8x128xf32>
    %cst_5 = arith.constant 0.000000e+00 : f32
    %7 = vector.broadcast %cst_5 : f32 to vector<8x128xf32>
    %8 = arith.maximumf %6, %7 : vector<8x128xf32>
    %9 = arith.truncf %8 : vector<8x128xf32> to vector<8x128xbf16>
    %c0_6 = arith.constant 0 : index
    %c0_7 = arith.constant 0 : index
    %10 = vector.load %arg3[%c0_6, %c0_7] : memref<384x256xbf16, #tpu.memory_space<vmem>>, vector<128x256xbf16>
    %cst_8 = arith.constant dense<0.000000e+00> : vector<8x256xf32>
    %11 = tpu.matmul %9, %10, %cst_8 {dimension_numbers = #tpu.dot_dimension_numbers<[1], [0], [0], [1], [0, 0, 1, 1], [], []>} : vector<8x128xbf16>, vector<128x256xbf16>, vector<8x256xf32> -> vector<8x256xf32>
    %12 = vector.extract_strided_slice %1 {offsets = [1, 0], sizes = [1, 256], strides = [1, 1]} : vector<8x256xf32> to vector<1x256xf32>
    %13 = vector.broadcast %12 : vector<1x256xf32> to vector<8x256xf32>
    %14 = arith.addf %11, %13 : vector<8x256xf32>
    %cst_9 = arith.constant 0.000000e+00 : f32
    %15 = vector.broadcast %cst_9 : f32 to vector<8x256xf32>
    %16 = arith.maximumf %14, %15 : vector<8x256xf32>
    %17 = arith.truncf %16 : vector<8x256xf32> to vector<8x256xbf16>
    %c128 = arith.constant 128 : index
    %c0_10 = arith.constant 0 : index
    %18 = vector.load %arg3[%c128, %c0_10] : memref<384x256xbf16, #tpu.memory_space<vmem>>, vector<256x256xbf16>
    %cst_11 = arith.constant dense<0.000000e+00> : vector<8x256xf32>
    %19 = tpu.matmul %17, %18, %cst_11 {dimension_numbers = #tpu.dot_dimension_numbers<[1], [0], [0], [1], [0, 0, 1, 1], [], []>} : vector<8x256xbf16>, vector<256x256xbf16>, vector<8x256xf32> -> vector<8x256xf32>
    %20 = vector.extract_strided_slice %1 {offsets = [2, 0], sizes = [1, 256], strides = [1, 1]} : vector<8x256xf32> to vector<1x256xf32>
    %21 = vector.broadcast %20 : vector<1x256xf32> to vector<8x256xf32>
    %22 = arith.addf %19, %21 : vector<8x256xf32>
    %cst_12 = arith.constant 0.000000e+00 : f32
    %23 = vector.broadcast %cst_12 : f32 to vector<8x256xf32>
    %24 = arith.maximumf %22, %23 : vector<8x256xf32>
    %25 = arith.truncf %24 : vector<8x256xf32> to vector<8x256xbf16>
    %c16 = arith.constant 16 : index
    %c0_13 = arith.constant 0 : index
    %26 = vector.load %arg2[%c16, %c0_13] : memref<528x128xbf16, #tpu.memory_space<vmem>>, vector<256x128xbf16>
    %cst_14 = arith.constant dense<0.000000e+00> : vector<8x128xf32>
    %27 = tpu.matmul %25, %26, %cst_14 {dimension_numbers = #tpu.dot_dimension_numbers<[1], [0], [0], [1], [0, 0, 1, 1], [], []>} : vector<8x256xbf16>, vector<256x128xbf16>, vector<8x128xf32> -> vector<8x128xf32>
    %28 = vector.extract_strided_slice %1 {offsets = [3, 0], sizes = [1, 128], strides = [1, 1]} : vector<8x256xf32> to vector<1x128xf32>
    %29 = vector.broadcast %28 : vector<1x128xf32> to vector<8x128xf32>
    %30 = arith.addf %27, %29 : vector<8x128xf32>
    %cst_15 = arith.constant 0.000000e+00 : f32
    %31 = vector.broadcast %cst_15 : f32 to vector<8x128xf32>
    %32 = arith.maximumf %30, %31 : vector<8x128xf32>
    %33 = arith.truncf %32 : vector<8x128xf32> to vector<8x128xbf16>
    %c272 = arith.constant 272 : index
    %c0_16 = arith.constant 0 : index
    %34 = vector.load %arg2[%c272, %c0_16] : memref<528x128xbf16, #tpu.memory_space<vmem>>, vector<128x128xbf16>
    %cst_17 = arith.constant dense<0.000000e+00> : vector<8x128xf32>
    %35 = tpu.matmul %33, %34, %cst_17 {dimension_numbers = #tpu.dot_dimension_numbers<[1], [0], [0], [1], [0, 0, 1, 1], [], []>} : vector<8x128xbf16>, vector<128x128xbf16>, vector<8x128xf32> -> vector<8x128xf32>
    %36 = vector.extract_strided_slice %1 {offsets = [4, 0], sizes = [1, 128], strides = [1, 1]} : vector<8x256xf32> to vector<1x128xf32>
    %37 = vector.broadcast %36 : vector<1x128xf32> to vector<8x128xf32>
    %38 = arith.addf %35, %37 : vector<8x128xf32>
    %cst_18 = arith.constant 0.000000e+00 : f32
    %39 = vector.broadcast %cst_18 : f32 to vector<8x128xf32>
    %40 = arith.maximumf %38, %39 : vector<8x128xf32>
    %41 = arith.truncf %40 : vector<8x128xf32> to vector<8x128xbf16>
    %c400 = arith.constant 400 : index
    %c0_19 = arith.constant 0 : index
    %42 = vector.load %arg2[%c400, %c0_19] : memref<528x128xbf16, #tpu.memory_space<vmem>>, vector<128x128xbf16>
    %cst_20 = arith.constant dense<0.000000e+00> : vector<8x128xf32>
    %43 = tpu.matmul %41, %42, %cst_20 {dimension_numbers = #tpu.dot_dimension_numbers<[1], [0], [0], [1], [0, 0, 1, 1], [], []>} : vector<8x128xbf16>, vector<128x128xbf16>, vector<8x128xf32> -> vector<8x128xf32>
    %44 = vector.extract_strided_slice %1 {offsets = [5, 0], sizes = [1, 128], strides = [1, 1]} : vector<8x256xf32> to vector<1x128xf32>
    %45 = vector.broadcast %44 : vector<1x128xf32> to vector<8x128xf32>
    %46 = arith.addf %43, %45 : vector<8x128xf32>
    %47 = tpu.iota {dimensions = array<i32: 1>} : vector<8x128xi32>
    %c0_i32 = arith.constant 0 : i32
    %48 = vector.broadcast %c0_i32 : i32 to vector<8x128xi32>
    %49 = arith.cmpi eq, %47, %48 : vector<8x128xi32>
    %50 = arith.negf %46 : vector<8x128xf32>
    %51 = math.exp %50 : vector<8x128xf32>
    %cst_21 = arith.constant 1.000000e+00 : f32
    %52 = vector.broadcast %cst_21 : f32 to vector<8x128xf32>
    %53 = arith.addf %52, %51 : vector<8x128xf32>
    %54 = arith.divf %52, %53 : vector<8x128xf32>
    %cst_22 = arith.constant 2.200000e-01 : f32
    %55 = vector.broadcast %cst_22 : f32 to vector<8x128xf32>
    %56 = arith.mulf %54, %55 : vector<8x128xf32>
    %c1_i32 = arith.constant 1 : i32
    %57 = vector.broadcast %c1_i32 : i32 to vector<8x128xi32>
    %58 = arith.cmpi eq, %47, %57 : vector<8x128xi32>
    %59 = math.tanh %46 : vector<8x128xf32>
    %cst_23 = arith.constant 2.000000e+00 : f32
    %60 = vector.broadcast %cst_23 : f32 to vector<8x128xf32>
    %61 = arith.mulf %59, %60 : vector<8x128xf32>
    %62 = arith.select %58, %61, %46 : vector<8x128xi1>, vector<8x128xf32>
    %63 = arith.select %49, %56, %62 : vector<8x128xi1>, vector<8x128xf32>
    %c0_24 = arith.constant 0 : index
    %c0_25 = arith.constant 0 : index
    %64 = vector.load %arg5[%c0_24, %c0_25] : memref<8x128xf32, #tpu.memory_space<vmem>>, vector<8x128xf32>
    tpu.vector_store %arg5[%c0_24, %c0_25], %63 {strides = array<i32>} : memref<8x128xf32, #tpu.memory_space<vmem>>, vector<8x128xf32>,
    return
  }
  func.func @transform_0(%arg0: i32) -> (i32, i32) {
    %c0_i32 = arith.constant 0 : i32
    %c0_i32_0 = arith.constant 0 : i32
    return %arg0, %c0_i32 : i32, i32
  }
  func.func @transform_1(%arg0: i32) -> (i32, i32) {
    %c0_i32 = arith.constant 0 : i32
    %c0_i32_0 = arith.constant 0 : i32
    %c0_i32_1 = arith.constant 0 : i32
    return %c0_i32, %c0_i32_0 : i32, i32
  }
  func.func @transform_2(%arg0: i32) -> (i32, i32) {
    %c0_i32 = arith.constant 0 : i32
    %c0_i32_0 = arith.constant 0 : i32
    %c0_i32_1 = arith.constant 0 : i32
    return %c0_i32, %c0_i32_0 : i32, i32
  }
  func.func @transform_3(%arg0: i32) -> (i32, i32) {
    %c0_i32 = arith.constant 0 : i32
    %c0_i32_0 = arith.constant 0 : i32
    %c0_i32_1 = arith.constant 0 : i32
    return %c0_i32, %c0_i32_0 : i32, i32
  }
  func.func @transform_4(%arg0: i32) -> (i32, i32) {
    %c0_i32 = arith.constant 0 : i32
    %c0_i32_0 = arith.constant 0 : i32
    return %arg0, %c0_i32 : i32, i32
  }
}

</mosaic_0001>

<bundles_post_ra>
// kernel: tpu_custom_call.1
= control target key start
LH: loop header
LB: loop body
LE: loop exit
PB: predicated region body
PF: predicated region fallthrough
CT: control target
= control target key end

     0   :  { %9 = vsyncpa [#allocation3], 0  ;;  %s1445_s0 = inlined_call_operand.hbm [shape: bf16[8,16], index: 0, kind: input, shape index: {}]   ;;  %s1446_s1 = inlined_call_operand.hbm [shape: bf16[528,128], index: 1, kind: input, shape index: {}]   ;;  %s1447_s2 = inlined_call_operand.hbm [shape: bf16[384,256], index: 2, kind: input, shape index: {}]   ;;  %s1448_s3 = inlined_call_operand.hbm [shape: f32[8,256], index: 3, kind: input, shape index: {}]   ;;  %s1449_s4 = inlined_call_operand.hbm [shape: f32[8,128], index: 4, kind: output, shape index: {}]  }
   0x1   :  { %10 = vsyncpa [#allocation6], 0 }
   0x2   :  { %11 = vsyncpa [#allocation9], 0 }
   0x3   :  { %12 = vsyncpa [#allocation4], 0  ;;  %s1352_s15 = smov [#allocation5]  }
   0x4   :  { %s28_s16 = sshll.u32 %s1352_s15, 4  ;;  %s29_s16 = int_to_ptr.vmem [resolvable:$true] %s28_s16 }
   0x5   :  { %s1252_s17 = scalar_lea.vmem %s29_s16, 4224  ;;  %p1257_p1 = scmp.lt.s32.totalorder %s29_s16, %s29_s16 }
   0x6   :  { %p1253_p0 = scmp.ne.s32.totalorder %s29_s16, %s1252_s17  ;;  %p1258_p2 = scmp.lt.s32.totalorder %s1252_s17, %s1252_s17 }
   0x8   :  { %p1259_p3 = por %p1258_p2, %p1257_p1 }
   0xa   :  { %p1260_p4 = pnand %p1259_p3, %p1253_p0 }
   0xc   :  { %1263 = shalt.err (!%p1260_p4)
}
   0xd   :  { %s1353_s18 = smov 64   ;;  %s1354_s19 = smov 4  }
   0xe   :  { %34 = dma.hbm_to_vmem [thread:$0]  %s1446_s1, 4224, %s29_s16, [#allocation6], %s1353_s18, %s1353_s18, %s1354_s19  }
   0xf   :  { %s1355_s22 = smov [#allocation2]   ;;  %s1356_s24 = smov [#allocation7]  }
  0x10   :  { %s19_s23 = sshll.u32 %s1355_s22, 4  ;;  %s40_s25 = sshll.u32 %s1356_s24, 4  ;;  %s20_s23 = int_to_ptr.vmem [resolvable:$true] %s19_s23  ;;  %s41_s25 = int_to_ptr.vmem [resolvable:$true] %s40_s25 }
  0x11   :  { %s1272_s26 = scalar_lea.vmem %s20_s23, 64  ;;  %p1277_p6 = scmp.lt.s32.totalorder %s20_s23, %s20_s23 }
  0x12   :  { %p1273_p5 = scmp.ne.s32.totalorder %s20_s23, %s1272_s26  ;;  %p1278_p7 = scmp.lt.s32.totalorder %s1272_s26, %s1272_s26 }
  0x14   :  { %p1279_p8 = por %p1278_p7, %p1277_p6 }
  0x16   :  { %p1280_p9 = pnand %p1279_p8, %p1273_p5 }
  0x18   :  { %1283 = shalt.err (!%p1280_p9)
}
  0x19   :  { %22 = dma.hbm_to_vmem [thread:$0]  %s1445_s0, 64, %s20_s23, [#allocation3]  }
  0x1a   :  { %s1292_s29 = scalar_lea.vmem %s41_s25, 6144  ;;  %p1297_p11 = scmp.lt.s32.totalorder %s41_s25, %s41_s25 }
  0x1b   :  { %p1293_p10 = scmp.ne.s32.totalorder %s41_s25, %s1292_s29  ;;  %p1298_p12 = scmp.lt.s32.totalorder %s1292_s29, %s1292_s29 }
  0x1d   :  { %p1299_p13 = por %p1298_p12, %p1297_p11 }
  0x1f   :  { %p1300_p0 = pnand %p1299_p13, %p1293_p10 }
  0x21   :  { %1303 = shalt.err (!%p1300_p0)
}
  0x22   :  { %s1357_s1 = smov 128   ;;  %s1358_s30 = smov 8  }
  0x23   :  { %46 = dma.hbm_to_vmem [thread:$0]  %s1447_s2, 6144, %s41_s25, [#allocation6], %s1357_s1, %s1357_s1, %s1358_s30  }
  0x24   :  { %s1359_s7 = smov [#allocation8]  }
  0x25   :  { %s53_s8 = sshll.u32 %s1359_s7, 4  ;;  %s54_s8 = int_to_ptr.vmem [resolvable:$true] %s53_s8 }
  0x26   :  { %s1312_s9 = scalar_lea.vmem %s54_s8, 256  ;;  %p1317_p2 = scmp.lt.s32.totalorder %s54_s8, %s54_s8 }
  0x27   :  { %p1313_p1 = scmp.ne.s32.totalorder %s54_s8, %s1312_s9  ;;  %p1318_p3 = scmp.lt.s32.totalorder %s1312_s9, %s1312_s9 }
  0x29   :  { %p1319_p4 = por %p1318_p3, %p1317_p2 }
  0x2b   :  { %p1320_p5 = pnand %p1319_p4, %p1313_p1 }
  0x2d   :  { %1323 = shalt.err (!%p1320_p5)
}
  0x2e   :  { %56 = dma.hbm_to_vmem [thread:$0]  %s1448_s3, 256, %s54_s8, [#allocation9]  }
  0x2f   :  { %1344 = dma.done.wait [#allocation3], 64  }
  0x30   :  { %1345 = vsyncadd [#allocation3], 4294967232 }
  0x31   :  { %1346 = dma.done.wait [#allocation6], 10368  }
  0x32   :  { %1347 = vsyncadd [#allocation6], 4294956928 }
  0x33   :  { %1348 = dma.done.wait [#allocation9], 256  }
  0x34   :  { %1349 = vsyncadd [#allocation9], 4294967040  ;;  %v1360_v0 = vmov 0.0   ;;  %vm1361_vm0 = vmmov 0   ;;  %v1133_v1 = vld [vmem:[#allocation5] sm:$0xff]   ;;  %vm85_vm1 = vcmask 130048   ;;  %v75_v48 = vlaneseq }
  0x35   :  { %1075 = vmatprep.subr.bf16.mxu0 %v1360_v0  ;;  %1077 = vmatprep.mubr.msk.bf16.mxu0 %vm1361_vm0, %v1360_v0  ;;  %v70_v2 = vld [vmem:[#allocation2] sm:$0xf]  ;;  %v1136_v4 = vld [vmem:[#allocation7 + $0x70] ss:$8 sps:$4 sm:$0xff]   ;;  %v1137_v5 = vld [vmem:[#allocation7 + $0x64] ss:$8 sps:$4 sm:$0xff]  }
  0x36   :  { %1076 = vmatpush3.bf16.msra.mxu0 %v1133_v1  ;;  %v1134_v3 = vld [vmem:[#allocation7 + $0x74] ss:$8 sps:$4 sm:$0xff]   ;;  %v1139_v6 = vld [vmem:[#allocation7 + $0x60] ss:$8 sps:$4 sm:$0xff]   ;;  %v1142_v8 = vld [vmem:[#allocation7 + $0x50] ss:$8 sps:$4 sm:$0xff]  }
  0x37   :  { %235 = vmatprep.subr.bf16.mxu1 %v1134_v3  ;;  %v1140_v7 = vld [vmem:[#allocation7 + $0x54] ss:$8 sps:$4 sm:$0xff]   ;;  %v1143_v9 = vld [vmem:[#allocation7 + $0x44] ss:$8 sps:$4 sm:$0xff]   ;;  %v1145_v10 = vld [vmem:[#allocation7 + $0x40] ss:$8 sps:$4 sm:$0xff]  }
  0x38   :  { %236 = vmatpush1.bf16.msra.mxu1 %v1136_v4  ;;  %v1146_v11 = vld [vmem:[#allocation7 + $0x34] ss:$8 sps:$4 sm:$0xff]   ;;  %v1148_v12 = vld [vmem:[#allocation7 + $0x30] ss:$8 sps:$4 sm:$0xff]   ;;  %v1149_v13 = vld [vmem:[#allocation7 + $0x24] ss:$8 sps:$4 sm:$0xff]  }
  0x39   :  { %1078 = vmatmul.mubr.msk.bf16.vlgmr.msra.gmra.mxu0 %vm85_vm1, %v70_v2  ;;  %237 = vmatprep.subr.bf16.mxu1 %v1137_v5  ;;  %v1151_v14 = vld [vmem:[#allocation7 + $0x20] ss:$8 sps:$4 sm:$0xff]   ;;  %v1152_v15 = vld [vmem:[#allocation7 + $0x14] ss:$8 sps:$4 sm:$0xff]   ;;  %v1154_v16 = vld [vmem:[#allocation7 + $0x10] ss:$8 sps:$4 sm:$0xff]  }
  0x3a   :  { %v1155_v17 = vld [vmem:[#allocation7 + $0x4] ss:$8 sps:$4 sm:$0xff]   ;;  %v1157_v18 = vld [vmem:[#allocation7] ss:$8 sps:$4 sm:$0xff]   ;;  %v1362_v19 = vmov 0   ;;  %v1405_v49 = vshrl.u32 %v75_v48, 7 }
  0x3b   :  { %267 = vmatprep.mubr.bf16.mxu1 %v1362_v19  ;;  %v1158_v20 = vld [vmem:[#allocation7 + $0xf0] ss:$8 sps:$4 sm:$0xff]   ;;  %v1160_v21 = vld [vmem:[#allocation7 + $0xf4] ss:$8 sps:$4 sm:$0xff]   ;;  %v1163_v22 = vld [vmem:[#allocation7 + $0xe4] ss:$8 sps:$4 sm:$0xff]  }
  0x3c   :  { %238 = vmatpush1.bf16.msra.mxu1 %v1139_v6  ;;  %480 = vmatprep.subr.bf16.mxu0 %v1160_v21  ;;  %v1161_v23 = vld [vmem:[#allocation7 + $0xe0] ss:$8 sps:$4 sm:$0xff]   ;;  %v1166_v24 = vld [vmem:[#allocation7 + $0xd4] ss:$8 sps:$4 sm:$0xff]   ;;  %v1164_v25 = vld [vmem:[#allocation7 + $0xd0] ss:$8 sps:$4 sm:$0xff]  }
  0x3d   :  { %239 = vmatprep.subr.bf16.mxu1 %v1140_v7  ;;  %481 = vmatpush1.bf16.msra.mxu0 %v1158_v20  ;;  %v1169_v26 = vld [vmem:[#allocation7 + $0xc4] ss:$8 sps:$4 sm:$0xff]   ;;  %v1167_v27 = vld [vmem:[#allocation7 + $0xc0] ss:$8 sps:$4 sm:$0xff]   ;;  %v1172_v28 = vld [vmem:[#allocation7 + $0xb4] ss:$8 sps:$4 sm:$0xff]  }
  0x3e   :  { %482 = vmatprep.subr.bf16.mxu0 %v1163_v22  ;;  %v1170_v29 = vld [vmem:[#allocation7 + $0xb0] ss:$8 sps:$4 sm:$0xff]   ;;  %v1175_v30 = vld [vmem:[#allocation7 + $0xa4] ss:$8 sps:$4 sm:$0xff]   ;;  %v1173_v31 = vld [vmem:[#allocation7 + $0xa0] ss:$8 sps:$4 sm:$0xff]  }
  0x3f   :  { %v1178_v32 = vld [vmem:[#allocation7 + $0x94] ss:$8 sps:$4 sm:$0xff]   ;;  %v1176_v33 = vld [vmem:[#allocation7 + $0x90] ss:$8 sps:$4 sm:$0xff]   ;;  %v1181_v34 = vld [vmem:[#allocation7 + $0x84] ss:$8 sps:$4 sm:$0xff]  }
  0x40   :  { %240 = vmatpush1.bf16.msra.mxu1 %v1142_v8  ;;  %v1179_v35 = vld [vmem:[#allocation7 + $0x80] ss:$8 sps:$4 sm:$0xff]   ;;  %v1184_v36 = vld [vmem:[#allocation7 + $0x174] ss:$8 sps:$4 sm:$0xff]   ;;  %v1182_v37 = vld [vmem:[#allocation7 + $0x170] ss:$8 sps:$4 sm:$0xff]  }
  0x41   :  { %241 = vmatprep.subr.bf16.mxu1 %v1143_v9  ;;  %483 = vmatpush1.bf16.msra.mxu0 %v1161_v23  ;;  %v1187_v38 = vld [vmem:[#allocation7 + $0x164] ss:$8 sps:$4 sm:$0xff]   ;;  %v1185_v39 = vld [vmem:[#allocation7 + $0x160] ss:$8 sps:$4 sm:$0xff]   ;;  %v1190_v40 = vld [vmem:[#allocation7 + $0x154] ss:$8 sps:$4 sm:$0xff]  }
  0x42   :  { %484 = vmatprep.subr.bf16.mxu0 %v1166_v24  ;;  %v1188_v41 = vld [vmem:[#allocation7 + $0x150] ss:$8 sps:$4 sm:$0xff]   ;;  %v1193_v42 = vld [vmem:[#allocation7 + $0x144] ss:$8 sps:$4 sm:$0xff]   ;;  %v1191_v43 = vld [vmem:[#allocation7 + $0x140] ss:$8 sps:$4 sm:$0xff]  }
  0x43   :  { %v1196_v44 = vld [vmem:[#allocation7 + $0x134] ss:$8 sps:$4 sm:$0xff]   ;;  %v1194_v45 = vld [vmem:[#allocation7 + $0x130] ss:$8 sps:$4 sm:$0xff]   ;;  %v1199_v46 = vld [vmem:[#allocation7 + $0x124] ss:$8 sps:$4 sm:$0xff]  }
  0x44   :  { %242 = vmatpush1.bf16.msra.mxu1 %v1145_v10  ;;  %v1197_v47 = vld [vmem:[#allocation7 + $0x120] ss:$8 sps:$4 sm:$0xff]   ;;  %v77_v50 = vsub.s32 0, %v1405_v49  ;;  %v1202_v60 = vld [vmem:[#allocation7 + $0x114] ss:$8 sps:$4 sm:$0xff]   ;;  %s1363_s2 = smov [#allocation10]  }
  0x45   :  { %243 = vmatprep.subr.bf16.mxu1 %v1146_v11  ;;  %485 = vmatpush1.bf16.msra.mxu0 %v1164_v25  ;;  %v1408_v51 = vld [vmem:[#allocation8] sm:$0xff]  ;;  %v1200_v61 = vld [vmem:[#allocation7 + $0x110] ss:$8 sps:$4 sm:$0xff]   ;;  %v1210_v5 = vld [vmem:[#allocation5 + $0x70] sm:$0xff]   ;;  %s939_s3 = sshll.u32 %s1363_s2, 4  ;;  %s940_s3 = int_to_ptr.vmem [resolvable:$true] %s939_s3 }
  0x46   :  { %486 = vmatprep.subr.bf16.mxu0 %v1169_v26  ;;  %v78_v52 = vrot.slane %v1408_v51, %v77_v50  ;;  %v1205_v62 = vld [vmem:[#allocation7 + $0x104] ss:$8 sps:$4 sm:$0xff]   ;;  %v1203_v63 = vld [vmem:[#allocation7 + $0x100] ss:$8 sps:$4 sm:$0xff]   ;;  %v1206_v1 = vld [vmem:[#allocation5 + $0x80] sm:$0xff]   ;;  %s1324_s11 = scalar_lea.vmem %s940_s3, 128  ;;  %p1329_p7 = scmp.lt.s32.totalorder %s940_s3, %s940_s3 }
  0x47   :  { %v1207_v2 = vld [vmem:[#allocation5 + $0x40] sm:$0xff]   ;;  %v1208_v3 = vld [vmem:[#allocation5 + $0x78] sm:$0xff]   ;;  %v1211_v6 = vld [vmem:[#allocation5 + $0x30] sm:$0xff]   ;;  %p1325_p6 = scmp.ne.s32.totalorder %s940_s3, %s1324_s11  ;;  %p1330_p8 = scmp.lt.s32.totalorder %s1324_s11, %s1324_s11 }
  0x48   :  { %244 = vmatpush1.bf16.msra.mxu1 %v1148_v12  ;;  %v1209_v4 = vld [vmem:[#allocation5 + $0x38] sm:$0xff]   ;;  %v1212_v7 = vld [vmem:[#allocation5 + $0x68] sm:$0xff]   ;;  %v1214_v9 = vld [vmem:[#allocation5 + $0x60] sm:$0xff]  }
  0x49   :  { %245 = vmatprep.subr.bf16.mxu1 %v1149_v13  ;;  %487 = vmatpush1.bf16.msra.mxu0 %v1167_v27  ;;  %v1213_v8 = vld [vmem:[#allocation5 + $0x28] sm:$0xff]   ;;  %v1215_v10 = vld [vmem:[#allocation5 + $0x20] sm:$0xff]   ;;  %v1216_v11 = vld [vmem:[#allocation5 + $0x58] sm:$0xff]   ;;  %v149_v13 = vsub.s32 1, %v1405_v49  ;;  %p1331_p9 = por %p1330_p8, %p1329_p7 }
  0x4a   :  { %488 = vmatprep.subr.bf16.mxu0 %v1172_v28  ;;  %v1217_v12 = vld [vmem:[#allocation5 + $0x18] sm:$0xff]   ;;  %v1218_v27 = vld [vmem:[#allocation5 + $0x50] sm:$0xff]   ;;  %v1226_v50 = vld [vmem:[#allocation5 + $0xa0] sm:$0xff]  }
  0x4b   :  { %v1219_v28 = vld [vmem:[#allocation5 + $0x10] sm:$0xff]   ;;  %p1332_p10 = pnand %p1331_p9, %p1325_p6 }
  0x4c   :  { %246 = vmatpush1.bf16.msra.mxu1 %v1151_v14  ;;  %v72_v14 = vld [vmem:[#allocation8 + $0x8] sm:$0xff] }
  0x4d   :  { %247 = vmatprep.subr.bf16.mxu1 %v1152_v15  ;;  %489 = vmatpush1.bf16.msra.mxu0 %v1170_v29  ;;  %v150_v15 = vrot.slane %v1408_v51, %v149_v13  ;;  %v1220_v29 = vld [vmem:[#allocation5 + $0x48] sm:$0xff]  }
  0x4e   :  { %490 = vmatprep.subr.bf16.mxu0 %v1175_v30  ;;  %v1221_v30 = vld [vmem:[#allocation5 + $0x8] sm:$0xff]  }
  0x50   :  { %248 = vmatpush1.bf16.msra.mxu1 %v1154_v16  ;;  %v154_v16 = vrot.slane %v72_v14, %v149_v13 }
  0x51   :  { %249 = vmatprep.subr.bf16.mxu1 %v1155_v17  ;;  %491 = vmatpush1.bf16.msra.mxu0 %v1173_v31  ;;  %v314_v31 = vsub.s32 2, %v1405_v49 }
  0x52   :  { %492 = vmatprep.subr.bf16.mxu0 %v1178_v32 }
  0x53   :  { %v315_v32 = vrot.slane %v1408_v51, %v314_v31 }
  0x54   :  { %250 = vmatpush1.bf16.msra.mxu1 %v1157_v18 }
  0x55   :  { %493 = vmatpush1.bf16.msra.mxu0 %v1176_v33  ;;  %1035 = vmatprep.subr.bf16.mxu1 %v1206_v1  ;;  %v319_v33 = vrot.slane %v72_v14, %v314_v31 }
  0x56   :  { %494 = vmatprep.subr.bf16.mxu0 %v1181_v34 }
  0x59   :  { %495 = vmatpush1.bf16.msra.mxu0 %v1179_v35 }
  0x5a   :  { %496 = vmatprep.subr.bf16.mxu0 %v1184_v36 }
  0x5d   :  { %497 = vmatpush2.bf16.msra.mxu0 %v1182_v37 }
  0x5e   :  { %498 = vmatprep.subr.bf16.mxu0 %v1187_v38 }
  0x61   :  { %499 = vmatpush2.bf16.msra.mxu0 %v1185_v39 }
  0x62   :  { %500 = vmatprep.subr.bf16.mxu0 %v1190_v40 }
  0x65   :  { %501 = vmatpush2.bf16.msra.mxu0 %v1188_v41 }
  0x66   :  { %502 = vmatprep.subr.bf16.mxu0 %v1193_v42 }
  0x69   :  { %503 = vmatpush2.bf16.msra.mxu0 %v1191_v43  ;;  %v1222_v43 = vld [vmem:[#allocation5 + $0xc0] sm:$0xff]  }
  0x6a   :  { %504 = vmatprep.subr.bf16.mxu0 %v1196_v44 }
  0x6d   :  { %505 = vmatpush2.bf16.msra.mxu0 %v1194_v45  ;;  %v1223_v45 = vld [vmem:[#allocation5 + $0xb8] sm:$0xff]  }
  0x6e   :  { %506 = vmatprep.subr.bf16.mxu0 %v1199_v46  ;;  %v1224_v46 = vld [vmem:[#allocation5 + $0xb0] sm:$0xff]  }
  0x71   :  { %507 = vmatpush2.bf16.msra.mxu0 %v1197_v47  ;;  %v1225_v47 = vld [vmem:[#allocation5 + $0xa8] sm:$0xff]  }
  0x72   :  { %508 = vmatprep.subr.bf16.mxu0 %v1202_v60  ;;  %v1235_v60 = vld [vmem:[#allocation5 + $0xd8] sm:$0xff]  }
  0x75   :  { %509 = vmatpush2.bf16.msra.mxu0 %v1200_v61  ;;  %v559_v61 = vsub.s32 3, %v1405_v49 }
  0x76   :  { %510 = vmatprep.subr.bf16.mxu0 %v1205_v62 }
  0x79   :  { %511 = vmatpush2.bf16.msra.mxu0 %v1203_v63  ;;  %v560_v63 = vrot.slane %v1408_v51, %v559_v61 }
  0x7a   :  { %1101 = vmatprep.subr.bf16.mxu0 %v1360_v0 }
  0xf9   :  { %v123_v53 = vpop.f32.mrf.mxu0 }
  0xfa   :  { %v124_v54 = vadd.f32 %v123_v53, %v78_v52  ;;  %v1227_v52 = vld [vmem:[#allocation5 + $0x98] sm:$0xff]   ;;  %v1228_v53 = vld [vmem:[#allocation5 + $0x90] sm:$0xff]  }
  0xfb   :  { %v1079_v55 = vpop.f32.mrf.mxu0 }
  0xfc   :  { %v129_v56 = vmax.f32 %v124_v54, 0.0  ;;  %v1229_v54 = vld [vmem:[#allocation5 + $0x88] sm:$0xff]   ;;  %v1230_v55 = vld [vmem:[#allocation5 + $0x100] sm:$0xff]  }
  0xfd   :  { %v126_v57 = vpop.f32.mrf.mxu0 }
  0xfe   :  { %v130_v58 = vpack.c.bf16 %v129_v56, %v129_v56  ;;  %v1231_v56 = vld [vmem:[#allocation5 + $0xf8] sm:$0xff]   ;;  %v1232_v57 = vld [vmem:[#allocation5 + $0xf0] sm:$0xff]  }
  0xff   :  { %v1080_v59 = vpop.f32.mrf.mxu0 }
 0x100   :  { %268 = vmatmul.mubr.bf16.vlgmr.msra.gmra.mxu1 %v130_v58  ;;  %v1233_v58 = vld [vmem:[#allocation5 + $0xe8] sm:$0xff]   ;;  %v1234_v59 = vld [vmem:[#allocation5 + $0xe0] sm:$0xff]  }
 0x101   :  { %1036 = vmatpush3.bf16.msra.mxu1 %v1207_v2 }
 0x102   :  { %1037 = vmatprep.subr.bf16.mxu1 %v1208_v3 }
 0x105   :  { %1038 = vmatpush3.bf16.msra.mxu1 %v1209_v4 }
 0x106   :  { %1039 = vmatprep.subr.bf16.mxu1 %v1210_v5 }
 0x109   :  { %1040 = vmatpush3.bf16.msra.mxu1 %v1211_v6 }
 0x10a   :  { %1041 = vmatprep.subr.bf16.mxu1 %v1212_v7 }
 0x10d   :  { %1042 = vmatpush3.bf16.msra.mxu1 %v1213_v8  ;;  %v1236_v8 = vld [vmem:[#allocation5 + $0xd0] sm:$0xff]  }
 0x10e   :  { %1043 = vmatprep.subr.bf16.mxu1 %v1214_v9  ;;  %v1237_v9 = vld [vmem:[#allocation5 + $0xc8] sm:$0xff]  }
 0x111   :  { %1044 = vmatpush3.bf16.msra.mxu1 %v1215_v10  ;;  %v717_v10 = vsub.s32 4, %v1405_v49 }
 0x112   :  { %1045 = vmatprep.subr.bf16.mxu1 %v1216_v11 }
 0x113   :  { %v718_v11 = vrot.slane %v1408_v51, %v717_v10 }
 0x115   :  { %1046 = vmatpush3.bf16.msra.mxu1 %v1217_v12 }
 0x116   :  { %1047 = vmatprep.subr.bf16.mxu1 %v1218_v27 }
 0x119   :  { %1048 = vmatpush3.bf16.msra.mxu1 %v1219_v28 }
 0x11a   :  { %1049 = vmatprep.subr.bf16.mxu1 %v1220_v29  ;;  %v918_v29 = vand.u32 127, %v75_v48 }
 0x11c   :  { %vm927_vm2 = vcmp.eq.s32.totalorder %v918_v29, 1  ;;  %vm919_vm3 = vcmp.eq.s32.totalorder %v918_v29, 0 }
 0x11d   :  { %1050 = vmatpush3.bf16.msra.mxu1 %v1221_v30 }
 0x11e   :  { %1081 = vmatprep.subr.bf16.mxu1 %v1360_v0 }
 0x1c0   :  { %v269_v17 = vpop.f32.mrf.mxu1 }
 0x1c1   :  { %v270_v18 = vadd.f32 %v269_v17, %v150_v15 }
 0x1c2   :  { %v271_v19 = vpop.f32.mrf.mxu1 }
 0x1c3   :  { %v272_v20 = vadd.f32 %v271_v19, %v154_v16  ;;  %v276_v21 = vmax.f32 %v270_v18, 0.0  ;;  %v827_v19 = vsub.s32 5, %v1405_v49 }
 0x1c4   :  { %v273_v22 = vpop.f32.mrf.mxu1 }
 0x1c5   :  { %v277_v23 = vmax.f32 %v272_v20, 0.0  ;;  %v278_v26 = vpack.c.bf16 %v276_v21, %v276_v21  ;;  %v828_v20 = vrot.slane %v1408_v51, %v827_v19 }
 0x1c6   :  { %v274_v24 = vpop.f32.mrf.mxu1 }
 0x1c7   :  { %v279_v25 = vpack.c.bf16 %v277_v23, %v277_v23 }
 0x1c9   :  { %512 = vmatprep.mubr.bf16.mxu0 %v279_v25 }
 0x1ca   :  { %513 = vmatmul.mubr.bf16.vlgmr.msra.gmra.mxu0 %v278_v26 }
 0x1cb   :  { %1117 = vmatprep.mubr.msk.bf16.mxu0 %vm1361_vm0, %v1360_v0  ;;  %1102 = vmatpush3.bf16.msra.mxu0 %v1230_v55 }
 0x1cc   :  { %1103 = vmatprep.subr.bf16.mxu0 %v1360_v0 }
 0x1cf   :  { %1104 = vmatpush3.bf16.msra.mxu0 %v1231_v56 }
 0x1d0   :  { %1105 = vmatprep.subr.bf16.mxu0 %v1360_v0 }
 0x1d3   :  { %1106 = vmatpush3.bf16.msra.mxu0 %v1232_v57 }
 0x1d4   :  { %1107 = vmatprep.subr.bf16.mxu0 %v1360_v0 }
 0x1d7   :  { %1108 = vmatpush3.bf16.msra.mxu0 %v1233_v58 }
 0x1d8   :  { %1109 = vmatprep.subr.bf16.mxu0 %v1360_v0 }
 0x1db   :  { %1110 = vmatpush3.bf16.msra.mxu0 %v1234_v59 }
 0x1dc   :  { %1111 = vmatprep.subr.bf16.mxu0 %v1360_v0 }
 0x1df   :  { %1112 = vmatpush3.bf16.msra.mxu0 %v1235_v60 }
 0x1e0   :  { %1113 = vmatprep.subr.bf16.mxu0 %v1360_v0 }
 0x1e3   :  { %1114 = vmatpush3.bf16.msra.mxu0 %v1236_v8 }
 0x1e4   :  { %1115 = vmatprep.subr.bf16.mxu0 %v1360_v0 }
 0x1e7   :  { %1116 = vmatpush3.bf16.msra.mxu0 %v1237_v9 }
 0x28a   :  { %v514_v34 = vpop.f32.mrf.mxu0 }
 0x28b   :  { %v515_v35 = vadd.f32 %v514_v34, %v315_v32 }
 0x28c   :  { %v516_v36 = vpop.f32.mrf.mxu0 }
 0x28d   :  { %v517_v37 = vadd.f32 %v516_v36, %v319_v33  ;;  %v521_v38 = vmax.f32 %v515_v35, 0.0 }
 0x28e   :  { %v518_v39 = vpop.f32.mrf.mxu0 }
 0x28f   :  { %v522_v40 = vmax.f32 %v517_v37, 0.0  ;;  %v523_v44 = vpack.c.bf16 %v521_v38, %v521_v38 }
 0x290   :  { %v519_v41 = vpop.f32.mrf.mxu0 }
 0x291   :  { %v524_v42 = vpack.c.bf16 %v522_v40, %v522_v40 }
 0x293   :  { %689 = vmatprep.mubr.bf16.mxu1 %v524_v42 }
 0x294   :  { %690 = vmatmul.mubr.bf16.vlgmr.msra.gmra.mxu1 %v523_v44 }
 0x295   :  { %1082 = vmatpush3.bf16.msra.mxu1 %v1222_v43  ;;  %1097 = vmatprep.mubr.msk.bf16.mxu1 %vm1361_vm0, %v1360_v0 }
 0x296   :  { %1083 = vmatprep.subr.bf16.mxu1 %v1360_v0 }
 0x299   :  { %1084 = vmatpush3.bf16.msra.mxu1 %v1223_v45 }
 0x29a   :  { %1085 = vmatprep.subr.bf16.mxu1 %v1360_v0 }
 0x29d   :  { %1086 = vmatpush3.bf16.msra.mxu1 %v1224_v46 }
 0x29e   :  { %1087 = vmatprep.subr.bf16.mxu1 %v1360_v0 }
 0x2a1   :  { %1088 = vmatpush3.bf16.msra.mxu1 %v1225_v47 }
 0x2a2   :  { %1089 = vmatprep.subr.bf16.mxu1 %v1360_v0 }
 0x2a5   :  { %1090 = vmatpush3.bf16.msra.mxu1 %v1226_v50 }
 0x2a6   :  { %1091 = vmatprep.subr.bf16.mxu1 %v1360_v0 }
 0x2a9   :  { %1092 = vmatpush3.bf16.msra.mxu1 %v1227_v52 }
 0x2aa   :  { %1093 = vmatprep.subr.bf16.mxu1 %v1360_v0 }
 0x2ad   :  { %1094 = vmatpush3.bf16.msra.mxu1 %v1228_v53 }
 0x2ae   :  { %1095 = vmatprep.subr.bf16.mxu1 %v1360_v0 }
 0x2b1   :  { %1096 = vmatpush3.bf16.msra.mxu1 %v1229_v54 }
 0x354   :  { %v1051_v62 = vpop.f32.mrf.mxu1 }
 0x356   :  { %v1052_v1 = vpop.f32.mrf.mxu1 }
 0x357   :  { %v1053_v2 = vadd.f32 %v1052_v1, %v1051_v62 }
 0x358   :  { %v1054_v3 = vpop.f32.mrf.mxu1 }
 0x359   :  { %v692_v4 = vadd.f32 %v1053_v2, %v560_v63 }
 0x35a   :  { %v1055_v5 = vpop.f32.mrf.mxu1 }
 0x35b   :  { %v697_v6 = vmax.f32 %v692_v4, 0.0 }
 0x35d   :  { %v698_v7 = vpack.c.bf16 %v697_v6, %v697_v6 }
 0x35f   :  { %1098 = vmatmul.mubr.bf16.vlgmr.msra.gmra.mxu1 %v698_v7 }
 0x41f   :  { %v801_v12 = vpop.f32.mrf.mxu1 }
 0x420   :  { %v802_v13 = vadd.f32 %v801_v12, %v718_v11 }
 0x421   :  { %v1099_v14 = vpop.f32.mrf.mxu1 }
 0x422   :  { %v807_v15 = vmax.f32 %v802_v13, 0.0 }
 0x423   :  { %v804_v16 = vpop.f32.mrf.mxu1 }
 0x424   :  { %v808_v17 = vpack.c.bf16 %v807_v15, %v807_v15 }
 0x425   :  { %v1100_v18 = vpop.f32.mrf.mxu1 }
 0x426   :  { %1118 = vmatmul.mubr.bf16.vlgmr.msra.gmra.mxu0 %v808_v17 }
 0x4e6   :  { %v911_v21 = vpop.f32.mrf.mxu0 }
 0x4e7   :  { %v912_v0 = vadd.f32 %v911_v21, %v828_v20 }
 0x4e8   :  { %v1119_v22 = vpop.f32.mrf.mxu0 }
 0x4e9   :  { %v1032_v23 = vmul.f32 -1.442695, %v912_v0 }
 0x4ea   :  { %v914_v24 = vpop.f32.mrf.mxu0 }
 0x4eb   :  { %1238 = vpow2.f32 %v1032_v23 }
 0x4ec   :  { %v1120_v25 = vpop.f32.mrf.mxu0  ;;  %1240 = vtanh.f32 %v912_v0 }
 0x4f8   :  { %v1239_v26 = vpop.eup %1238 }
 0x4f9   :  { %v923_v27 = vadd.f32 1.0, %v1239_v26  ;;  %v1241_v28 = vpop.eup %1240 }
 0x4fa   :  { %v929_v30 = vmul.f32 2.0, %v1241_v28 }
 0x4fb   :  { %1242 = vrcp.f32 %v923_v27 }
 0x4fc   :  { %v930_v31 = vsel %vm927_vm2, %v929_v30, %v912_v0 }
 0x508   :  { %v1243_v49 = vpop.eup %1242 }
 0x509   :  { %v926_v51 = vmul.f32 0.22, %v1243_v49 }
 0x50b   :  { %v931_v32 = vsel %vm919_vm3, %v926_v51, %v930_v31 }
 0x50c   :  { %932 = vst [vmem:[#allocation10] sm:$0xff] %v931_v32 }
 0x50d   :  { %1335 = shalt.err (!%p1332_p10)
}
 0x50e   :  { %942 = dma.vmem_to_hbm [thread:$0]  %s940_s3, 128, %s1449_s4, [#allocation4]  }
 0x50f   :  { %1350 = dma.done.wait [#allocation4], 128  }
 0x510   :  { %1351 = vsyncadd [#allocation4], 4294967168 }
 0x511   :  { %946 = vsyncpa [#allocation3], 1 }
 0x512   :  { %947 = vsyncpa [#allocation6], 1 }
 0x513   :  { %948 = vsyncpa [#allocation9], 1 }
 0x514   :  { %949 = vsyncpa [#allocation4], 1 }

</bundles_post_ra>
